<compile_context>
chip_gen: v7x
topology: tpu7x:2x2x1
jax: 0.10.0
libtpu: 0.0.40
codegen_flags: <defaults>
</compile_context>

<pallas_src>
import jax
import jax.numpy as jnp
from jax import lax
from jax.experimental import pallas as pl
from jax.experimental.pallas import tpu as pltpu

EPS = 2e-5


# --------------------------- Pallas kernels ---------------------------------

def resblock_stage1_kernel(x_ref, scale1_ref, shift1_ref, w1_ref, cb1_ref,
                           h1_ref, s1_ref, s2_ref):
    """h1 = Conv3x3(ReLU(BN1(x))) + cb1, plus per-block sums for BN2 stats.

    The 3x3 conv is ONE K-fused MXU matmul: dx taps + W zero-padding are folded
    into a block-Toeplitz weight (wrapper), dy taps are XLU sublane rolls with
    image-boundary masks, concatenated along K."""
    img, height, wcin = x_ref.shape
    rows = img * height
    wch = h1_ref.shape[-1]

    x2 = x_ref[...].reshape(rows, wcin).astype(jnp.float32)
    a = jnp.maximum(x2 * scale1_ref[...] + shift1_ref[...], 0.0)   # BN1+ReLU, f32

    # dy = -1 / +1 taps: rolls along the image-major row axis; rows that would
    # cross an image boundary are zeroed (the conv's H zero-padding).
    row = lax.broadcasted_iota(jnp.int32, (rows, 1), 0)
    a_up = jnp.where((row % height) != 0, pltpu.roll(a, 1, axis=0), 0.0)
    a_dn = jnp.where((row % height) != height - 1,
                     pltpu.roll(a, rows - 1, axis=0), 0.0)

    # Single matmul: [a(y-1), a(y), a(y+1)] @ [w(ky=0); w(ky=1); w(ky=2)].
    a_cat = jnp.concatenate([a_up, a, a_dn], axis=-1).astype(jnp.bfloat16)
    h1 = jnp.dot(a_cat, w1_ref[...], preferred_element_type=jnp.float32)
    h1 = h1 + cb1_ref[...]                                         # (rows, wch) f32

    h1_bf = h1.astype(h1_ref.dtype)
    h1_ref[...] = h1_bf.reshape(img, height, wch)

    # BN2 partial sums, taken on the same bf16-rounded values stage 2 reads.
    h1f = h1_bf.astype(jnp.float32)
    s1_ref[...] = jnp.sum(h1f, axis=0, keepdims=True)[None]
    s2_ref[...] = jnp.sum(h1f * h1f, axis=0, keepdims=True)[None]


def resblock_stage2_kernel(x_ref, h1_ref, scale2_ref, shift2_ref, w2_ref,
                           bias_ref, out_ref):
    """out = Conv3x3(ReLU(BN2(h1))) + Conv1x1(x) + (cb2 + bsc).

    Conv2 and the learnable 1x1 shortcut are fused into a single MXU matmul
    with K = 3*W*Ch + W*Cin."""
    img, height, wcin = x_ref.shape
    rows = img * height
    wch = h1_ref.shape[-1]
    wcout = out_ref.shape[-1]

    h = h1_ref[...].reshape(rows, wch).astype(jnp.float32)
    a = jnp.maximum(h * scale2_ref[...] + shift2_ref[...], 0.0)    # BN2+ReLU, f32

    row = lax.broadcasted_iota(jnp.int32, (rows, 1), 0)
    a_up = jnp.where((row % height) != 0, pltpu.roll(a, 1, axis=0), 0.0)
    a_dn = jnp.where((row % height) != height - 1,
                     pltpu.roll(a, rows - 1, axis=0), 0.0)

    xsc = x_ref[...].reshape(rows, wcin).astype(jnp.float32)
    a_cat = jnp.concatenate([a_up, a, a_dn, xsc], axis=-1).astype(jnp.bfloat16)

    acc = jnp.dot(a_cat, w2_ref[...], preferred_element_type=jnp.float32)
    out = (acc + bias_ref[...]).reshape(img, height, wcout)
    out_ref[...] = out.astype(out_ref.dtype)


# --------------------------- wrapper helpers ---------------------------------

def _toeplitz_conv_weight(w, width):
    """(3,3,Cin,Cout) HWIO weight -> (3*W*Cin, W*Cout) K-stacked block-Toeplitz.

    Folds the dx taps and the width zero-padding into the weight; the three dy
    taps are stacked along K to match concat([a(y-1), a(y), a(y+1)], lane)."""
    kh, kw, cin, cout = w.shape
    wi = jnp.arange(width)[:, None]           # input column index
    wo = jnp.arange(width)[None, :]           # output column index
    dx = wi - wo + (kw // 2)
    valid = (dx >= 0) & (dx < kw)
    wt = w[:, jnp.clip(dx, 0, kw - 1), :, :]                 # (kh, W, W, cin, cout)
    wt = jnp.where(valid[None, :, :, None, None], wt, 0.0)
    wt = jnp.transpose(wt, (0, 1, 3, 2, 4))                  # (kh, wi, cin, wo, cout)
    return wt.reshape(kh * width * cin, width * cout)


def _blockdiag_weight(wsc, width):
    """(Cin,Cout) 1x1-conv weight -> (W*Cin, W*Cout) block-diagonal weight."""
    cin, cout = wsc.shape
    big = jnp.eye(width, dtype=wsc.dtype)[:, None, :, None] * wsc[None, :, None, :]
    return big.reshape(width * cin, width * cout)


def _pick_img_per_block(n, height, target_rows=256):
    """Largest divisor of n with img_per_block*height <= target_rows (MXU M fill)."""
    best = 1
    for d in range(1, n + 1):
        if n % d == 0 and d * height <= target_rows:
            best = d
    return best


def residual_block_forward(x_nchw, params, img_per_block=None,
                           core_parallel=False, out_dtype=jnp.float32):
    """x_nchw: (N, Cin, H, W) float32 -> (N, Cout, H, W)."""
    w1, cb1, w2, cb2, wsc, bsc, g1, be1, g2, be2 = params
    N, Cin, H, W = x_nchw.shape
    Ch = w1.shape[-1]
    Cout = w2.shape[-1]

    if img_per_block is None:
        img_per_block = _pick_img_per_block(N, H)
    assert N % img_per_block == 0
    nblk = N // img_per_block
    rows = img_per_block * H

    # NCHW -> lane-dense (N, H, W*C).  Boundary conversion only: a full
    # NHWC / (N, H, W*C) pipeline would keep this layout end-to-end.
    x_nhwc = jnp.transpose(x_nchw, (0, 2, 3, 1)).astype(jnp.float32)

    # ---- BN1 batch stats in f32 (two-pass), decoupled from the kernels ----
    mean1 = jnp.mean(x_nhwc, axis=(0, 1, 2))
    var1 = jnp.var(x_nhwc, axis=(0, 1, 2))                          # biased
    scale1 = g1.reshape(-1) * lax.rsqrt(var1 + EPS)
    shift1 = be1.reshape(-1) - mean1 * scale1
    scale1_row = jnp.tile(scale1, W)[None, :]                       # (1, W*Cin) f32
    shift1_row = jnp.tile(shift1, W)[None, :]
    cb1_row = jnp.tile(cb1.reshape(-1), W)[None, :]                 # (1, W*Ch) f32

    # bf16 activations halve x HBM traffic; BN math stays f32 in-kernel.
    x3 = x_nhwc.reshape(N, H, W * Cin).astype(jnp.bfloat16)

    w1_fused = _toeplitz_conv_weight(w1, W).astype(jnp.bfloat16)    # (3*W*Cin, W*Ch)

    def full_spec(a):
        nd = a.ndim
        # Grid-invariant operand: index_map constant -> DMA'd once.  (The
        # default 2x buffer allocation is negligible at these weight sizes;
        # switch to pipeline_mode=pl.Buffered(1) / scratch when Toeplitz
        # weights grow, especially on v7x's 64 MiB VMEM.)
        return pl.BlockSpec(a.shape, lambda i, _nd=nd: (0,) * _nd)

    def img_spec(c):
        return pl.BlockSpec((img_per_block, H, W * c), lambda i: (i, 0, 0))

    stat_spec = pl.BlockSpec((1, 1, W * Ch), lambda i: (i, 0, 0))

    # On v7x pass core_parallel=True so the batch axis truly splits across the
    # two TensorCores (plain "parallel" does not guarantee the 2-TC split).
    sem = (pltpu.CORE_PARALLEL,) if core_parallel else ("parallel",)

    # Explicit VMEM budget: double-buffered blocks + in-kernel temporaries,
    # never below the default scoped limit of any generation.  Re-budget
    # (smaller img_per_block / K-tiled weights) for v7x at realistic sizes.
    est = 4 * (3 * W * Cin * W * Ch * 2
               + (3 * W * Ch + W * Cin) * W * Cout * 2
               + 10 * rows * W * max(Cin, Ch, Cout) * 4)
    vmem_limit = int(min(max(est, 32 * 1024 * 1024), 100 * 1024 * 1024))
    cparams = pltpu.CompilerParams(dimension_semantics=sem,
                                   vmem_limit_bytes=vmem_limit)

    # ---- Stage 1: h1 = Conv3x3(ReLU(BN1(x))), plus BN2 partial sums ----
    h1, s1, s2 = pl.pallas_call(
        resblock_stage1_kernel,
        grid=(nblk,),
        in_specs=[img_spec(Cin), full_spec(scale1_row), full_spec(shift1_row),
                  full_spec(w1_fused), full_spec(cb1_row)],
        out_specs=[img_spec(Ch), stat_spec, stat_spec],
        out_shape=[jax.ShapeDtypeStruct((N, H, W * Ch), jnp.bfloat16),
                   jax.ShapeDtypeStruct((nblk, 1, W * Ch), jnp.float32),
                   jax.ShapeDtypeStruct((nblk, 1, W * Ch), jnp.float32)],
        compiler_params=cparams,
    )(x3, scale1_row, shift1_row, w1_fused, cb1_row)

    # ---- BN2 batch stats from stage-1 partial sums (single pass over h1) ----
    cnt = jnp.float32(N * H * W)
    sum1 = jnp.sum(s1.reshape(nblk, W, Ch), axis=(0, 1))
    sum2 = jnp.sum(s2.reshape(nblk, W, Ch), axis=(0, 1))
    mean2 = sum1 / cnt
    var2 = jnp.maximum(sum2 / cnt - mean2 * mean2, 0.0)             # biased
    scale2 = g2.reshape(-1) * lax.rsqrt(var2 + EPS)
    shift2 = be2.reshape(-1) - mean2 * scale2
    scale2_row = jnp.tile(scale2, W)[None, :]                       # (1, W*Ch) f32
    shift2_row = jnp.tile(shift2, W)[None, :]

    # Conv2 and the learnable 1x1 shortcut fused along K.
    w2_toep = _toeplitz_conv_weight(w2, W)                          # (3*W*Ch, W*Cout)
    wsc_big = _blockdiag_weight(wsc, W)                             # (W*Cin, W*Cout)
    w2_fused = jnp.concatenate([w2_toep, wsc_big], axis=0).astype(jnp.bfloat16)
    bias_row = (jnp.tile(cb2.reshape(-1), W)
                + jnp.tile(bsc.reshape(-1), W))[None, :]            # (1, W*Cout) f32

    # ---- Stage 2: out = Conv3x3(ReLU(BN2(h1))) + Conv1x1(x) + biases ----
    out3 = pl.pallas_call(
        resblock_stage2_kernel,
        grid=(nblk,),
        in_specs=[img_spec(Cin), img_spec(Ch), full_spec(scale2_row),
                  full_spec(shift2_row), full_spec(w2_fused),
                  full_spec(bias_row)],
        out_specs=img_spec(Cout),
        out_shape=jax.ShapeDtypeStruct((N, H, W * Cout), out_dtype),
        compiler_params=cparams,
    )(x3, h1, scale2_row, shift2_row, w2_fused, bias_row)

    out = out3.reshape(N, H, W, Cout)
    return jnp.transpose(out, (0, 3, 1, 2))                         # -> NCHW


# ------------------ pure-JAX reference (correctness check) -------------------

def _bn_relu(x, g, b):
    m = jnp.mean(x, axis=(0, 1, 2), keepdims=True)
    v = jnp.mean((x - m) ** 2, axis=(0, 1, 2), keepdims=True)
    return jnp.maximum((x - m) * lax.rsqrt(v + EPS) * g + b, 0.0)


def reference_forward(x_nchw, params):
    x = jnp.transpose(x_nchw, (0, 2, 3, 1))
    w1, cb1, w2, cb2, wsc, bsc, g1, be1, g2, be2 = params
    dn = ('NHWC', 'HWIO', 'NHWC')
    h = _bn_relu(x, g1, be1)
    h = lax.conv_general_dilated(h, w1, (1, 1), ((1, 1), (1, 1)),
                                 dimension_numbers=dn) + cb1
    h = _bn_relu(h, g2, be2)
    h = lax.conv_general_dilated(h, w2, (1, 1), ((1, 1), (1, 1)),
                                 dimension_numbers=dn) + cb2
    sc = lax.conv_general_dilated(x, wsc[None, None], (1, 1), ((0, 0), (0, 0)),
                                  dimension_numbers=dn) + bsc
    return jnp.transpose(h + sc, (0, 3, 1, 2))


def make_params(key, cin, ch, cout):
    ks = jax.random.split(key, 10)
    w1 = 0.1 * jax.random.normal(ks[0], (3, 3, cin, ch), jnp.float32)
    cb1 = 0.1 * jax.random.normal(ks[1], (1, 1, 1, ch), jnp.float32)
    w2 = 0.1 * jax.random.normal(ks[2], (3, 3, ch, cout), jnp.float32)
    cb2 = 0.1 * jax.random.normal(ks[3], (1, 1, 1, cout), jnp.float32)
    wsc = 0.1 * jax.random.normal(ks[4], (cin, cout), jnp.float32)
    bsc = 0.1 * jax.random.normal(ks[5], (1, 1, 1, cout), jnp.float32)
    g1 = 1.0 + 0.1 * jax.random.normal(ks[6], (1, 1, 1, cin), jnp.float32)
    be1 = 0.1 * jax.random.normal(ks[7], (1, 1, 1, cin), jnp.float32)
    g2 = 1.0 + 0.1 * jax.random.normal(ks[8], (1, 1, 1, ch), jnp.float32)
    be2 = 0.1 * jax.random.normal(ks[9], (1, 1, 1, ch), jnp.float32)
    return (w1, cb1, w2, cb2, wsc, bsc, g1, be1, g2, be2)


if __name__ == "__main__":
    key = jax.random.PRNGKey(0)
    k_x, k_p = jax.random.split(key)

    N, Cin, H, W = 2, 4, 16, 16      # in_channels=4
    Ch, Cout = 8, 8                   # hidden=out=8 -> learnable shortcut

    x = jax.random.normal(k_x, (N, Cin, H, W), jnp.float32)
    params = make_params(k_p, Cin, Ch, Cout)

    fwd = jax.jit(residual_block_forward)
    out = jax.block_until_ready(fwd(x, params))
    ref = jax.block_until_ready(reference_forward(x, params))

    assert out.shape == (N, Cout, H, W)
    err = float(jnp.max(jnp.abs(out - ref)))
    # bf16 MXU operands / bf16 activation transport (f32 accumulation and BN
    # math) -> relaxed tolerance vs the all-f32 reference.
    assert jnp.allclose(out, ref, rtol=5e-2, atol=5e-2), f"max abs err {err}"

    print("KERNEL_OK")
</pallas_src>

<mosaic_0001>
module attributes {stable_mosaic.version = 11 : i64} {
  func.func @resblock_stage1_kernel(%arg0: i32, %arg1: memref<2x16x64xbf16, #tpu.memory_space<vmem>>, %arg2: memref<1x64xf32, #tpu.memory_space<vmem>>, %arg3: memref<1x64xf32, #tpu.memory_space<vmem>>, %arg4: memref<192x128xbf16, #tpu.memory_space<vmem>>, %arg5: memref<1x128xf32, #tpu.memory_space<vmem>>, %arg6: memref<2x16x128xbf16, #tpu.memory_space<vmem>>, %arg7: memref<1x1x128xf32, #tpu.memory_space<vmem>>, %arg8: memref<1x1x128xf32, #tpu.memory_space<vmem>>) attributes {dimension_semantics = [#tpu.dimension_semantics<parallel>], iteration_bounds = array<i64: 1>, scalar_prefetch = 0 : i64, scratch_operands = 0 : i64, tpu.core_type = #tpu.core_type<tc>, window_params = [{transform_indices = @transform_0, window_bounds = array<i64: 2, 16, 64>}, {pipeline_mode = #tpu.pipeline_mode<synchronous>, transform_indices = @transform_1, window_bounds = array<i64: 1, 64>}, {pipeline_mode = #tpu.pipeline_mode<synchronous>, transform_indices = @transform_2, window_bounds = array<i64: 1, 64>}, {pipeline_mode = #tpu.pipeline_mode<synchronous>, transform_indices = @transform_3, window_bounds = array<i64: 192, 128>}, {pipeline_mode = #tpu.pipeline_mode<synchronous>, transform_indices = @transform_4, window_bounds = array<i64: 1, 128>}, {transform_indices = @transform_5, window_bounds = array<i64: 2, 16, 128>}, {transform_indices = @transform_6, window_bounds = array<i64: 1, 1, 128>}, {transform_indices = @transform_7, window_bounds = array<i64: 1, 1, 128>}]} {
    %c0 = arith.constant 0 : index
    %c0_0 = arith.constant 0 : index
    %c0_1 = arith.constant 0 : index
    %0 = vector.load %arg1[%c0, %c0_0, %c0_1] : memref<2x16x64xbf16, #tpu.memory_space<vmem>>, vector<2x16x64xbf16>
    %1 = vector.shape_cast %0 : vector<2x16x64xbf16> to vector<32x64xbf16>
    %2 = arith.extf %1 : vector<32x64xbf16> to vector<32x64xf32>
    %c0_2 = arith.constant 0 : index
    %c0_3 = arith.constant 0 : index
    %3 = vector.load %arg2[%c0_2, %c0_3] : memref<1x64xf32, #tpu.memory_space<vmem>>, vector<1x64xf32>
    %4 = vector.broadcast %3 : vector<1x64xf32> to vector<32x64xf32>
    %5 = arith.mulf %2, %4 : vector<32x64xf32>
    %c0_4 = arith.constant 0 : index
    %c0_5 = arith.constant 0 : index
    %6 = vector.load %arg3[%c0_4, %c0_5] : memref<1x64xf32, #tpu.memory_space<vmem>>, vector<1x64xf32>
    %7 = vector.broadcast %6 : vector<1x64xf32> to vector<32x64xf32>
    %8 = arith.addf %5, %7 : vector<32x64xf32>
    %cst = arith.constant 0.000000e+00 : f32
    %9 = vector.broadcast %cst : f32 to vector<32x64xf32>
    %10 = arith.maximumf %8, %9 : vector<32x64xf32>
    %11 = tpu.iota {dimensions = array<i32: 0>} : vector<32x1xi32>
    %c16_i32 = arith.constant 16 : i32
    %c0_i32 = arith.constant 0 : i32
    %12 = arith.cmpi eq, %c16_i32, %c0_i32 : i32
    %c1_i32 = arith.constant 1 : i32
    %13 = arith.select %12, %c1_i32, %c16_i32 : i32
    %14 = vector.broadcast %13 : i32 to vector<32x1xi32>
    %15 = arith.remsi %11, %14 : vector<32x1xi32>
    %c0_i32_6 = arith.constant 0 : i32
    %16 = vector.broadcast %c0_i32_6 : i32 to vector<32x1xi32>
    %17 = arith.cmpi ne, %15, %16 : vector<32x1xi32>
    %c0_i32_7 = arith.constant 0 : i32
    %18 = vector.broadcast %c0_i32_7 : i32 to vector<32x1xi32>
    %19 = arith.cmpi slt, %15, %18 : vector<32x1xi32>
    %c0_i32_8 = arith.constant 0 : i32
    %20 = arith.cmpi slt, %13, %c0_i32_8 : i32
    %21 = vector.broadcast %20 : i1 to vector<32x1xi1>
    %22 = vector.broadcast %21 : vector<32x1xi1> to vector<32x1xi1>
    %23 = arith.xori %19, %22 : vector<32x1xi1>
    %24 = arith.andi %23, %17 : vector<32x1xi1>
    %25 = vector.broadcast %13 : i32 to vector<32x1xi32>
    %26 = arith.addi %15, %25 : vector<32x1xi32>
    %27 = arith.select %24, %26, %15 : vector<32x1xi1>, vector<32x1xi32>
    %c0_i32_9 = arith.constant 0 : i32
    %28 = vector.broadcast %c0_i32_9 : i32 to vector<32x1xi32>
    %29 = arith.cmpi ne, %27, %28 : vector<32x1xi32>
    %c1_i32_10 = arith.constant 1 : i32
    %30 = tpu.dynamic_rotate %10 by %c1_i32_10 dim 0 : vector<32x64xf32>, i32 -> vector<32x64xf32>
    %cst_11 = arith.constant 0.000000e+00 : f32
    %31 = vector.shape_cast %29 : vector<32x1xi1> to vector<32x1xi1>
    %32 = vector.broadcast %31 : vector<32x1xi1> to vector<32x64xi1>
    %33 = vector.broadcast %cst_11 : f32 to vector<32x64xf32>
    %34 = arith.select %32, %30, %33 : vector<32x64xi1>, vector<32x64xf32>
    %c16_i32_12 = arith.constant 16 : i32
    %c0_i32_13 = arith.constant 0 : i32
    %35 = arith.cmpi eq, %c16_i32_12, %c0_i32_13 : i32
    %c1_i32_14 = arith.constant 1 : i32
    %36 = arith.select %35, %c1_i32_14, %c16_i32_12 : i32
    %37 = vector.broadcast %36 : i32 to vector<32x1xi32>
    %38 = arith.remsi %11, %37 : vector<32x1xi32>
    %c0_i32_15 = arith.constant 0 : i32
    %39 = vector.broadcast %c0_i32_15 : i32 to vector<32x1xi32>
    %40 = arith.cmpi ne, %38, %39 : vector<32x1xi32>
    %c0_i32_16 = arith.constant 0 : i32
    %41 = vector.broadcast %c0_i32_16 : i32 to vector<32x1xi32>
    %42 = arith.cmpi slt, %38, %41 : vector<32x1xi32>
    %c0_i32_17 = arith.constant 0 : i32
    %43 = arith.cmpi slt, %36, %c0_i32_17 : i32
    %44 = vector.broadcast %43 : i1 to vector<32x1xi1>
    %45 = vector.broadcast %44 : vector<32x1xi1> to vector<32x1xi1>
    %46 = arith.xori %42, %45 : vector<32x1xi1>
    %47 = arith.andi %46, %40 : vector<32x1xi1>
    %48 = vector.broadcast %36 : i32 to vector<32x1xi32>
    %49 = arith.addi %38, %48 : vector<32x1xi32>
    %50 = arith.select %47, %49, %38 : vector<32x1xi1>, vector<32x1xi32>
    %c15_i32 = arith.constant 15 : i32
    %51 = vector.broadcast %c15_i32 : i32 to vector<32x1xi32>
    %52 = arith.cmpi ne, %50, %51 : vector<32x1xi32>
    %c31_i32 = arith.constant 31 : i32
    %53 = tpu.dynamic_rotate %10 by %c31_i32 dim 0 : vector<32x64xf32>, i32 -> vector<32x64xf32>
    %cst_18 = arith.constant 0.000000e+00 : f32
    %54 = vector.shape_cast %52 : vector<32x1xi1> to vector<32x1xi1>
    %55 = vector.broadcast %54 : vector<32x1xi1> to vector<32x64xi1>
    %56 = vector.broadcast %cst_18 : f32 to vector<32x64xf32>
    %57 = arith.select %55, %53, %56 : vector<32x64xi1>, vector<32x64xf32>
    %58 = tpu.concatenate %34, %10, %57 in 1 : vector<32x64xf32>, vector<32x64xf32>, vector<32x64xf32> -> vector<32x192xf32>
    %59 = arith.truncf %58 : vector<32x192xf32> to vector<32x192xbf16>
    %c0_19 = arith.constant 0 : index
    %c0_20 = arith.constant 0 : index
    %60 = vector.load %arg4[%c0_19, %c0_20] : memref<192x128xbf16, #tpu.memory_space<vmem>>, vector<192x128xbf16>
    %cst_21 = arith.constant dense<0.000000e+00> : vector<32x128xf32>
    %61 = tpu.matmul %59, %60, %cst_21 {dimension_numbers = #tpu.dot_dimension_numbers<[1], [0], [0], [1], [0, 0, 1, 1], [], []>} : vector<32x192xbf16>, vector<192x128xbf16>, vector<32x128xf32> -> vector<32x128xf32>
    %c0_22 = arith.constant 0 : index
    %c0_23 = arith.constant 0 : index
    %62 = vector.load %arg5[%c0_22, %c0_23] : memref<1x128xf32, #tpu.memory_space<vmem>>, vector<1x128xf32>
    %63 = vector.broadcast %62 : vector<1x128xf32> to vector<32x128xf32>
    %64 = arith.addf %61, %63 : vector<32x128xf32>
    %65 = arith.truncf %64 : vector<32x128xf32> to vector<32x128xbf16>
    %66 = vector.shape_cast %65 : vector<32x128xbf16> to vector<2x16x128xbf16>
    %c0_24 = arith.constant 0 : index
    %c0_25 = arith.constant 0 : index
    %c0_26 = arith.constant 0 : index
    %67 = vector.load %arg6[%c0_24, %c0_25, %c0_26] : memref<2x16x128xbf16, #tpu.memory_space<vmem>>, vector<2x16x128xbf16>
    tpu.vector_store %arg6[%c0_24, %c0_25, %c0_26], %66 {strides = array<i32>} : memref<2x16x128xbf16, #tpu.memory_space<vmem>>, vector<2x16x128xbf16>,
    %68 = arith.extf %65 : vector<32x128xbf16> to vector<32x128xf32>
    %cst_27 = arith.constant dense<0.000000e+00> : vector<128xf32>
    %69 = vector.multi_reduction <add>, %68, %cst_27 [0] : vector<32x128xf32> to vector<128xf32>
    %70 = vector.shape_cast %69 : vector<128xf32> to vector<1x128xf32>
    %71 = vector.shape_cast %70 : vector<1x128xf32> to vector<1x1x128xf32>
    %c0_28 = arith.constant 0 : index
    %c0_29 = arith.constant 0 : index
    %c0_30 = arith.constant 0 : index
    %72 = vector.load %arg7[%c0_28, %c0_29, %c0_30] : memref<1x1x128xf32, #tpu.memory_space<vmem>>, vector<1x1x128xf32>
    tpu.vector_store %arg7[%c0_28, %c0_29, %c0_30], %71 {strides = array<i32>} : memref<1x1x128xf32, #tpu.memory_space<vmem>>, vector<1x1x128xf32>,
    %73 = arith.mulf %68, %68 : vector<32x128xf32>
    %cst_31 = arith.constant dense<0.000000e+00> : vector<128xf32>
    %74 = vector.multi_reduction <add>, %73, %cst_31 [0] : vector<32x128xf32> to vector<128xf32>
    %75 = vector.shape_cast %74 : vector<128xf32> to vector<1x128xf32>
    %76 = vector.shape_cast %75 : vector<1x128xf32> to vector<1x1x128xf32>
    %c0_32 = arith.constant 0 : index
    %c0_33 = arith.constant 0 : index
    %c0_34 = arith.constant 0 : index
    %77 = vector.load %arg8[%c0_32, %c0_33, %c0_34] : memref<1x1x128xf32, #tpu.memory_space<vmem>>, vector<1x1x128xf32>
    tpu.vector_store %arg8[%c0_32, %c0_33, %c0_34], %76 {strides = array<i32>} : memref<1x1x128xf32, #tpu.memory_space<vmem>>, vector<1x1x128xf32>,
    return
  }
  func.func @transform_0(%arg0: i32) -> (i32, i32, i32) {
    %c0_i32 = arith.constant 0 : i32
    %c0_i32_0 = arith.constant 0 : i32
    %c0_i32_1 = arith.constant 0 : i32
    return %arg0, %c0_i32, %c0_i32_0 : i32, i32, i32
  }
  func.func @transform_1(%arg0: i32) -> (i32, i32) {
    %c0_i32 = arith.constant 0 : i32
    %c0_i32_0 = arith.constant 0 : i32
    %c0_i32_1 = arith.constant 0 : i32
    return %c0_i32, %c0_i32_0 : i32, i32
  }
  func.func @transform_2(%arg0: i32) -> (i32, i32) {
    %c0_i32 = arith.constant 0 : i32
    %c0_i32_0 = arith.constant 0 : i32
    %c0_i32_1 = arith.constant 0 : i32
    return %c0_i32, %c0_i32_0 : i32, i32
  }
  func.func @transform_3(%arg0: i32) -> (i32, i32) {
    %c0_i32 = arith.constant 0 : i32
    %c0_i32_0 = arith.constant 0 : i32
    %c0_i32_1 = arith.constant 0 : i32
    return %c0_i32, %c0_i32_0 : i32, i32
  }
  func.func @transform_4(%arg0: i32) -> (i32, i32) {
    %c0_i32 = arith.constant 0 : i32
    %c0_i32_0 = arith.constant 0 : i32
    %c0_i32_1 = arith.constant 0 : i32
    return %c0_i32, %c0_i32_0 : i32, i32
  }
  func.func @transform_5(%arg0: i32) -> (i32, i32, i32) {
    %c0_i32 = arith.constant 0 : i32
    %c0_i32_0 = arith.constant 0 : i32
    %c0_i32_1 = arith.constant 0 : i32
    return %arg0, %c0_i32, %c0_i32_0 : i32, i32, i32
  }
  func.func @transform_6(%arg0: i32) -> (i32, i32, i32) {
    %c0_i32 = arith.constant 0 : i32
    %c0_i32_0 = arith.constant 0 : i32
    %c0_i32_1 = arith.constant 0 : i32
    return %arg0, %c0_i32, %c0_i32_0 : i32, i32, i32
  }
  func.func @transform_7(%arg0: i32) -> (i32, i32, i32) {
    %c0_i32 = arith.constant 0 : i32
    %c0_i32_0 = arith.constant 0 : i32
    %c0_i32_1 = arith.constant 0 : i32
    return %arg0, %c0_i32, %c0_i32_0 : i32, i32, i32
  }
}

module attributes {stable_mosaic.version = 11 : i64} {
  func.func @resblock_stage2_kernel(%arg0: i32, %arg1: memref<2x16x64xbf16, #tpu.memory_space<vmem>>, %arg2: memref<2x16x128xbf16, #tpu.memory_space<vmem>>, %arg3: memref<1x128xf32, #tpu.memory_space<vmem>>, %arg4: memref<1x128xf32, #tpu.memory_space<vmem>>, %arg5: memref<448x128xbf16, #tpu.memory_space<vmem>>, %arg6: memref<1x128xf32, #tpu.memory_space<vmem>>, %arg7: memref<2x16x128xf32, #tpu.memory_space<vmem>>) attributes {dimension_semantics = [#tpu.dimension_semantics<parallel>], iteration_bounds = array<i64: 1>, scalar_prefetch = 0 : i64, scratch_operands = 0 : i64, tpu.core_type = #tpu.core_type<tc>, window_params = [{transform_indices = @transform_0, window_bounds = array<i64: 2, 16, 64>}, {transform_indices = @transform_1, window_bounds = array<i64: 2, 16, 128>}, {pipeline_mode = #tpu.pipeline_mode<synchronous>, transform_indices = @transform_2, window_bounds = array<i64: 1, 128>}, {pipeline_mode = #tpu.pipeline_mode<synchronous>, transform_indices = @transform_3, window_bounds = array<i64: 1, 128>}, {pipeline_mode = #tpu.pipeline_mode<synchronous>, transform_indices = @transform_4, window_bounds = array<i64: 448, 128>}, {pipeline_mode = #tpu.pipeline_mode<synchronous>, transform_indices = @transform_5, window_bounds = array<i64: 1, 128>}, {transform_indices = @transform_6, window_bounds = array<i64: 2, 16, 128>}]} {
    %c0 = arith.constant 0 : index
    %c0_0 = arith.constant 0 : index
    %c0_1 = arith.constant 0 : index
    %0 = vector.load %arg2[%c0, %c0_0, %c0_1] : memref<2x16x128xbf16, #tpu.memory_space<vmem>>, vector<2x16x128xbf16>
    %1 = vector.shape_cast %0 : vector<2x16x128xbf16> to vector<32x128xbf16>
    %2 = arith.extf %1 : vector<32x128xbf16> to vector<32x128xf32>
    %c0_2 = arith.constant 0 : index
    %c0_3 = arith.constant 0 : index
    %3 = vector.load %arg3[%c0_2, %c0_3] : memref<1x128xf32, #tpu.memory_space<vmem>>, vector<1x128xf32>
    %4 = vector.broadcast %3 : vector<1x128xf32> to vector<32x128xf32>
    %5 = arith.mulf %2, %4 : vector<32x128xf32>
    %c0_4 = arith.constant 0 : index
    %c0_5 = arith.constant 0 : index
    %6 = vector.load %arg4[%c0_4, %c0_5] : memref<1x128xf32, #tpu.memory_space<vmem>>, vector<1x128xf32>
    %7 = vector.broadcast %6 : vector<1x128xf32> to vector<32x128xf32>
    %8 = arith.addf %5, %7 : vector<32x128xf32>
    %cst = arith.constant 0.000000e+00 : f32
    %9 = vector.broadcast %cst : f32 to vector<32x128xf32>
    %10 = arith.maximumf %8, %9 : vector<32x128xf32>
    %11 = tpu.iota {dimensions = array<i32: 0>} : vector<32x1xi32>
    %c16_i32 = arith.constant 16 : i32
    %c0_i32 = arith.constant 0 : i32
    %12 = arith.cmpi eq, %c16_i32, %c0_i32 : i32
    %c1_i32 = arith.constant 1 : i32
    %13 = arith.select %12, %c1_i32, %c16_i32 : i32
    %14 = vector.broadcast %13 : i32 to vector<32x1xi32>
    %15 = arith.remsi %11, %14 : vector<32x1xi32>
    %c0_i32_6 = arith.constant 0 : i32
    %16 = vector.broadcast %c0_i32_6 : i32 to vector<32x1xi32>
    %17 = arith.cmpi ne, %15, %16 : vector<32x1xi32>
    %c0_i32_7 = arith.constant 0 : i32
    %18 = vector.broadcast %c0_i32_7 : i32 to vector<32x1xi32>
    %19 = arith.cmpi slt, %15, %18 : vector<32x1xi32>
    %c0_i32_8 = arith.constant 0 : i32
    %20 = arith.cmpi slt, %13, %c0_i32_8 : i32
    %21 = vector.broadcast %20 : i1 to vector<32x1xi1>
    %22 = vector.broadcast %21 : vector<32x1xi1> to vector<32x1xi1>
    %23 = arith.xori %19, %22 : vector<32x1xi1>
    %24 = arith.andi %23, %17 : vector<32x1xi1>
    %25 = vector.broadcast %13 : i32 to vector<32x1xi32>
    %26 = arith.addi %15, %25 : vector<32x1xi32>
    %27 = arith.select %24, %26, %15 : vector<32x1xi1>, vector<32x1xi32>
    %c0_i32_9 = arith.constant 0 : i32
    %28 = vector.broadcast %c0_i32_9 : i32 to vector<32x1xi32>
    %29 = arith.cmpi ne, %27, %28 : vector<32x1xi32>
    %c1_i32_10 = arith.constant 1 : i32
    %30 = tpu.dynamic_rotate %10 by %c1_i32_10 dim 0 : vector<32x128xf32>, i32 -> vector<32x128xf32>
    %cst_11 = arith.constant 0.000000e+00 : f32
    %31 = vector.shape_cast %29 : vector<32x1xi1> to vector<32x1xi1>
    %32 = vector.broadcast %31 : vector<32x1xi1> to vector<32x128xi1>
    %33 = vector.broadcast %cst_11 : f32 to vector<32x128xf32>
    %34 = arith.select %32, %30, %33 : vector<32x128xi1>, vector<32x128xf32>
    %c16_i32_12 = arith.constant 16 : i32
    %c0_i32_13 = arith.constant 0 : i32
    %35 = arith.cmpi eq, %c16_i32_12, %c0_i32_13 : i32
    %c1_i32_14 = arith.constant 1 : i32
    %36 = arith.select %35, %c1_i32_14, %c16_i32_12 : i32
    %37 = vector.broadcast %36 : i32 to vector<32x1xi32>
    %38 = arith.remsi %11, %37 : vector<32x1xi32>
    %c0_i32_15 = arith.constant 0 : i32
    %39 = vector.broadcast %c0_i32_15 : i32 to vector<32x1xi32>
    %40 = arith.cmpi ne, %38, %39 : vector<32x1xi32>
    %c0_i32_16 = arith.constant 0 : i32
    %41 = vector.broadcast %c0_i32_16 : i32 to vector<32x1xi32>
    %42 = arith.cmpi slt, %38, %41 : vector<32x1xi32>
    %c0_i32_17 = arith.constant 0 : i32
    %43 = arith.cmpi slt, %36, %c0_i32_17 : i32
    %44 = vector.broadcast %43 : i1 to vector<32x1xi1>
    %45 = vector.broadcast %44 : vector<32x1xi1> to vector<32x1xi1>
    %46 = arith.xori %42, %45 : vector<32x1xi1>
    %47 = arith.andi %46, %40 : vector<32x1xi1>
    %48 = vector.broadcast %36 : i32 to vector<32x1xi32>
    %49 = arith.addi %38, %48 : vector<32x1xi32>
    %50 = arith.select %47, %49, %38 : vector<32x1xi1>, vector<32x1xi32>
    %c15_i32 = arith.constant 15 : i32
    %51 = vector.broadcast %c15_i32 : i32 to vector<32x1xi32>
    %52 = arith.cmpi ne, %50, %51 : vector<32x1xi32>
    %c31_i32 = arith.constant 31 : i32
    %53 = tpu.dynamic_rotate %10 by %c31_i32 dim 0 : vector<32x128xf32>, i32 -> vector<32x128xf32>
    %cst_18 = arith.constant 0.000000e+00 : f32
    %54 = vector.shape_cast %52 : vector<32x1xi1> to vector<32x1xi1>
    %55 = vector.broadcast %54 : vector<32x1xi1> to vector<32x128xi1>
    %56 = vector.broadcast %cst_18 : f32 to vector<32x128xf32>
    %57 = arith.select %55, %53, %56 : vector<32x128xi1>, vector<32x128xf32>
    %c0_19 = arith.constant 0 : index
    %c0_20 = arith.constant 0 : index
    %c0_21 = arith.constant 0 : index
    %58 = vector.load %arg1[%c0_19, %c0_20, %c0_21] : memref<2x16x64xbf16, #tpu.memory_space<vmem>>, vector<2x16x64xbf16>
    %59 = vector.shape_cast %58 : vector<2x16x64xbf16> to vector<32x64xbf16>
    %60 = arith.extf %59 : vector<32x64xbf16> to vector<32x64xf32>
    %61 = tpu.concatenate %34, %10, %57, %60 in 1 : vector<32x128xf32>, vector<32x128xf32>, vector<32x128xf32>, vector<32x64xf32> -> vector<32x448xf32>
    %62 = arith.truncf %61 : vector<32x448xf32> to vector<32x448xbf16>
    %c0_22 = arith.constant 0 : index
    %c0_23 = arith.constant 0 : index
    %63 = vector.load %arg5[%c0_22, %c0_23] : memref<448x128xbf16, #tpu.memory_space<vmem>>, vector<448x128xbf16>
    %cst_24 = arith.constant dense<0.000000e+00> : vector<32x128xf32>
    %64 = tpu.matmul %62, %63, %cst_24 {dimension_numbers = #tpu.dot_dimension_numbers<[1], [0], [0], [1], [0, 0, 1, 1], [], []>} : vector<32x448xbf16>, vector<448x128xbf16>, vector<32x128xf32> -> vector<32x128xf32>
    %c0_25 = arith.constant 0 : index
    %c0_26 = arith.constant 0 : index
    %65 = vector.load %arg6[%c0_25, %c0_26] : memref<1x128xf32, #tpu.memory_space<vmem>>, vector<1x128xf32>
    %66 = vector.broadcast %65 : vector<1x128xf32> to vector<32x128xf32>
    %67 = arith.addf %64, %66 : vector<32x128xf32>
    %68 = vector.shape_cast %67 : vector<32x128xf32> to vector<2x16x128xf32>
    %c0_27 = arith.constant 0 : index
    %c0_28 = arith.constant 0 : index
    %c0_29 = arith.constant 0 : index
    %69 = vector.load %arg7[%c0_27, %c0_28, %c0_29] : memref<2x16x128xf32, #tpu.memory_space<vmem>>, vector<2x16x128xf32>
    tpu.vector_store %arg7[%c0_27, %c0_28, %c0_29], %68 {strides = array<i32>} : memref<2x16x128xf32, #tpu.memory_space<vmem>>, vector<2x16x128xf32>,
    return
  }
  func.func @transform_0(%arg0: i32) -> (i32, i32, i32) {
    %c0_i32 = arith.constant 0 : i32
    %c0_i32_0 = arith.constant 0 : i32
    %c0_i32_1 = arith.constant 0 : i32
    return %arg0, %c0_i32, %c0_i32_0 : i32, i32, i32
  }
  func.func @transform_1(%arg0: i32) -> (i32, i32, i32) {
    %c0_i32 = arith.constant 0 : i32
    %c0_i32_0 = arith.constant 0 : i32
    %c0_i32_1 = arith.constant 0 : i32
    return %arg0, %c0_i32, %c0_i32_0 : i32, i32, i32
  }
  func.func @transform_2(%arg0: i32) -> (i32, i32) {
    %c0_i32 = arith.constant 0 : i32
    %c0_i32_0 = arith.constant 0 : i32
    %c0_i32_1 = arith.constant 0 : i32
    return %c0_i32, %c0_i32_0 : i32, i32
  }
  func.func @transform_3(%arg0: i32) -> (i32, i32) {
    %c0_i32 = arith.constant 0 : i32
    %c0_i32_0 = arith.constant 0 : i32
    %c0_i32_1 = arith.constant 0 : i32
    return %c0_i32, %c0_i32_0 : i32, i32
  }
  func.func @transform_4(%arg0: i32) -> (i32, i32) {
    %c0_i32 = arith.constant 0 : i32
    %c0_i32_0 = arith.constant 0 : i32
    %c0_i32_1 = arith.constant 0 : i32
    return %c0_i32, %c0_i32_0 : i32, i32
  }
  func.func @transform_5(%arg0: i32) -> (i32, i32) {
    %c0_i32 = arith.constant 0 : i32
    %c0_i32_0 = arith.constant 0 : i32
    %c0_i32_1 = arith.constant 0 : i32
    return %c0_i32, %c0_i32_0 : i32, i32
  }
  func.func @transform_6(%arg0: i32) -> (i32, i32, i32) {
    %c0_i32 = arith.constant 0 : i32
    %c0_i32_0 = arith.constant 0 : i32
    %c0_i32_1 = arith.constant 0 : i32
    return %arg0, %c0_i32, %c0_i32_0 : i32, i32, i32
  }
}

</mosaic_0001>

<bundles_post_ra>
// kernel: tile.35
= control target key start
LH: loop header
LB: loop body
LE: loop exit
PB: predicated region body
PF: predicated region fallthrough
CT: control target
= control target key end

     0   :  { %s28_s0 = inlined_call_operand.vmem [shape: f32[4], index: 0, kind: input, shape index: {}]   ;;  %s29_s1 = inlined_call_operand.vmem [shape: f32[16,4], index: 1, kind: output, shape index: {}]  }
   0x1   :  { %v4_v0 = vld [vmem:[%s28_s0] ss:$0 sm:$0xff] }
   0x2   :  { %5 = vst [vmem:[%s29_s1] sm:$0xff] %v4_v0  ;;  %8 = vst [vmem:[%s29_s1 + $0x8] sm:$0xff] %v4_v0 }

// kernel: tile.36
= control target key start
LH: loop header
LB: loop body
LE: loop exit
PB: predicated region body
PF: predicated region fallthrough
CT: control target
= control target key end

     0   :  { %s131_s10 = smov 60   ;;  %s132_s11 = smov 52   ;;  %vm3_vm0 = vcmask 31744   ;;  %vm9_vm1 = vcmask 523744   ;;  %vm15_vm2 = vcmask 490944   ;;  %vm21_vm3 = vcmask 458144   ;;  %s207_s0 = inlined_call_operand.vmem [shape: f32[16,4], index: 0, kind: input, shape index: {}]   ;;  %s208_s1 = inlined_call_operand.vmem [shape: f32[1,64], index: 1, kind: output, shape index: {}]  }
   0x1   :  { %v101_v0 = vld [vmem:[%s207_s0 + $0xf] sm:$0x1]   ;;  %v103_v1 = vld [vmem:[%s207_s0 + $0xd] sm:$0x1]   ;;  %v102_v2 = vld [vmem:[%s207_s0 + $0xe] sm:$0x1]  }
   0x2   :  { %7 = vrot.lane.b32.xlu0 %v101_v0, %s131_s10  ;;  %19 = vrot.lane.b32.xlu1 %v103_v1, %s132_s11  ;;  %v104_v3 = vld [vmem:[%s207_s0 + $0xc] sm:$0x1]   ;;  %s133_s16 = smov 56   ;;  %s134_s17 = smov 48   ;;  %v105_v4 = vld [vmem:[%s207_s0 + $0xb] sm:$0x1]  }
   0x3   :  { %v106_v5 = vld [vmem:[%s207_s0 + $0xa] sm:$0x1]   ;;  %v2_v6 = vld [vmem:[%s207_s0] sm:$0x1]   ;;  %s135_s24 = smov 44   ;;  %s136_s25 = smov 40  }
   0x4   :  { %4 = vst.msk [vmem:[#allocation0] sm:$0x1] %vm3_vm0, %v2_v6   ;;  %v107_v7 = vld [vmem:[%s207_s0 + $0x9] sm:$0x1]   ;;  %v108_v8 = vld [vmem:[%s207_s0 + $0x8] sm:$0x1]  }
   0x5   :  { %s137_s30 = smov 36   ;;  %s138_s2 = smov 32   ;;  %v109_v9 = vld [vmem:[%s207_s0 + $0x7] sm:$0x1]   ;;  %v110_v10 = vld [vmem:[%s207_s0 + $0x6] sm:$0x1]  }
   0x6   :  { %13 = vrot.lane.b32.xlu0 %v102_v2, %s133_s16  ;;  %25 = vrot.lane.b32.xlu1 %v104_v3, %s134_s17  ;;  %s139_s7 = smov 28   ;;  %s140_s8 = smov 24   ;;  %v111_v11 = vld [vmem:[%s207_s0 + $0x5] sm:$0x1]   ;;  %v112_v12 = vld [vmem:[%s207_s0 + $0x4] sm:$0x1]  }
   0x7   :  { %s141_s13 = smov 20   ;;  %s142_s14 = smov 16   ;;  %v113_v13 = vld [vmem:[%s207_s0 + $0x3] sm:$0x1]   ;;  %v114_v14 = vld [vmem:[%s207_s0 + $0x2] sm:$0x1]  }
   0x8   :  { %s143_s19 = smov 12   ;;  %s144_s20 = smov 8   ;;  %v115_v15 = vld [vmem:[%s207_s0 + $0x1] sm:$0x1]   ;;  %vm27_vm4 = vcmask 425344   ;;  %vm33_vm5 = vcmask 392544  }
   0x9   :  { %s145_s0 = smov 4   ;;  %vm39_vm6 = vcmask 359744   ;;  %vm45_vm7 = vcmask 326944   ;;  %vm51_vm8 = vcmask 294144   ;;  %vm57_vm9 = vcmask 261344  }
   0xa   :  { %31 = vrot.lane.b32.xlu0 %v105_v4, %s135_s24  ;;  %37 = vrot.lane.b32.xlu1 %v106_v5, %s136_s25  ;;  %vm63_vm10 = vcmask 228544   ;;  %vm69_vm11 = vcmask 195744   ;;  %vm75_vm12 = vcmask 162944   ;;  %vm81_vm13 = vcmask 130144  }
   0xb   :  { %vm87_vm14 = vcmask 97344   ;;  %vm93_vm15 = vcmask 64544  }
   0xe   :  { %43 = vrot.lane.b32.xlu0 %v107_v7, %s137_s30  ;;  %49 = vrot.lane.b32.xlu1 %v108_v8, %s138_s2 }
  0x12   :  { %55 = vrot.lane.b32.xlu0 %v109_v9, %s139_s7  ;;  %61 = vrot.lane.b32.xlu1 %v110_v10, %s140_s8 }
  0x16   :  { %67 = vrot.lane.b32.xlu0 %v111_v11, %s141_s13  ;;  %73 = vrot.lane.b32.xlu1 %v112_v12, %s142_s14 }
  0x1a   :  { %79 = vrot.lane.b32.xlu0 %v113_v13, %s143_s19  ;;  %85 = vrot.lane.b32.xlu1 %v114_v14, %s144_s20 }
  0x1e   :  { %91 = vrot.lane.b32.xlu0 %v115_v15, %s145_s0 }
  0x74   :  { %v8_v16 = vpop.permute.xlu0 %7   ;;  %v20_v17 = vpop.permute.xlu1 %19  }
  0x75   :  { %10 = vst.msk [vmem:[#allocation0] sm:$0x1] %vm9_vm1, %v8_v16  }
  0x78   :  { %v14_v18 = vpop.permute.xlu0 %13   ;;  %v26_v19 = vpop.permute.xlu1 %25  }
  0x79   :  { %16 = vst.msk [vmem:[#allocation0] sm:$0x1] %vm15_vm2, %v14_v18  }
  0x7a   :  { %22 = vst.msk [vmem:[#allocation0] sm:$0x1] %vm21_vm3, %v20_v17  }
  0x7b   :  { %28 = vst.msk [vmem:[#allocation0] sm:$0x1] %vm27_vm4, %v26_v19  }
  0x7c   :  { %v32_v20 = vpop.permute.xlu0 %31   ;;  %v38_v21 = vpop.permute.xlu1 %37  }
  0x7d   :  { %34 = vst.msk [vmem:[#allocation0] sm:$0x1] %vm33_vm5, %v32_v20  }
  0x7e   :  { %40 = vst.msk [vmem:[#allocation0] sm:$0x1] %vm39_vm6, %v38_v21  }
  0x80   :  { %v44_v22 = vpop.permute.xlu0 %43   ;;  %v50_v23 = vpop.permute.xlu1 %49  }
  0x81   :  { %46 = vst.msk [vmem:[#allocation0] sm:$0x1] %vm45_vm7, %v44_v22  }
  0x82   :  { %52 = vst.msk [vmem:[#allocation0] sm:$0x1] %vm51_vm8, %v50_v23  }
  0x84   :  { %v56_v24 = vpop.permute.xlu0 %55   ;;  %v62_v25 = vpop.permute.xlu1 %61  }
  0x85   :  { %58 = vst.msk [vmem:[#allocation0] sm:$0x1] %vm57_vm9, %v56_v24  }
  0x86   :  { %64 = vst.msk [vmem:[#allocation0] sm:$0x1] %vm63_vm10, %v62_v25  }
  0x88   :  { %v68_v26 = vpop.permute.xlu0 %67   ;;  %v74_v27 = vpop.permute.xlu1 %73  }
  0x89   :  { %70 = vst.msk [vmem:[#allocation0] sm:$0x1] %vm69_vm11, %v68_v26  }
  0x8a   :  { %76 = vst.msk [vmem:[#allocation0] sm:$0x1] %vm75_vm12, %v74_v27  }
  0x8c   :  { %v80_v28 = vpop.permute.xlu0 %79   ;;  %v86_v29 = vpop.permute.xlu1 %85  }
  0x8d   :  { %82 = vst.msk [vmem:[#allocation0] sm:$0x1] %vm81_vm13, %v80_v28  }
  0x8e   :  { %88 = vst.msk [vmem:[#allocation0] sm:$0x1] %vm87_vm14, %v86_v29  }
  0x90   :  { %v92_v30 = vpop.permute.xlu0 %91  }
  0x91   :  { %94 = vst.msk [vmem:[#allocation0] sm:$0x1] %vm93_vm15, %v92_v30  }
  0x98   :  { %v98_v31 = vld [vmem:[#allocation0] sm:$0x1] }
  0x99   :  { %100 = vst [vmem:[%s208_s1] sm:$0x1] %v98_v31 }

// kernel: tile.44
= control target key start
LH: loop header
LB: loop body
LE: loop exit
PB: predicated region body
PF: predicated region fallthrough
CT: control target
= control target key end

     0   :  { %s28_s0 = inlined_call_operand.vmem [shape: f32[8], index: 0, kind: input, shape index: {}]   ;;  %s29_s1 = inlined_call_operand.vmem [shape: f32[16,8], index: 1, kind: output, shape index: {}]  }
   0x1   :  { %v4_v0 = vld [vmem:[%s28_s0] ss:$0 sm:$0xff] }
   0x2   :  { %5 = vst [vmem:[%s29_s1] sm:$0xff] %v4_v0  ;;  %8 = vst [vmem:[%s29_s1 + $0x8] sm:$0xff] %v4_v0 }

// kernel: tile.45
= control target key start
LH: loop header
LB: loop body
LE: loop exit
PB: predicated region body
PF: predicated region fallthrough
CT: control target
= control target key end

     0   :  { %s131_s10 = smov 120   ;;  %s132_s11 = smov 104   ;;  %vm3_vm0 = vcmask 64512   ;;  %vm9_vm1 = vcmask 1048512   ;;  %vm15_vm2 = vcmask 982912   ;;  %vm21_vm3 = vcmask 917312   ;;  %s207_s0 = inlined_call_operand.vmem [shape: f32[16,8], index: 0, kind: input, shape index: {}]   ;;  %s208_s1 = inlined_call_operand.vmem [shape: f32[1,128], index: 1, kind: output, shape index: {}]  }
   0x1   :  { %v101_v0 = vld [vmem:[%s207_s0 + $0xf] sm:$0x1]   ;;  %v103_v1 = vld [vmem:[%s207_s0 + $0xd] sm:$0x1]   ;;  %v102_v2 = vld [vmem:[%s207_s0 + $0xe] sm:$0x1]  }
   0x2   :  { %7 = vrot.lane.b32.xlu0 %v101_v0, %s131_s10  ;;  %19 = vrot.lane.b32.xlu1 %v103_v1, %s132_s11  ;;  %v104_v3 = vld [vmem:[%s207_s0 + $0xc] sm:$0x1]   ;;  %s133_s16 = smov 112   ;;  %s134_s17 = smov 96   ;;  %v105_v4 = vld [vmem:[%s207_s0 + $0xb] sm:$0x1]  }
   0x3   :  { %v106_v5 = vld [vmem:[%s207_s0 + $0xa] sm:$0x1]   ;;  %v2_v6 = vld [vmem:[%s207_s0] sm:$0x1]   ;;  %s135_s24 = smov 88   ;;  %s136_s25 = smov 80  }
   0x4   :  { %4 = vst.msk [vmem:[#allocation0] sm:$0x1] %vm3_vm0, %v2_v6   ;;  %v107_v7 = vld [vmem:[%s207_s0 + $0x9] sm:$0x1]   ;;  %v108_v8 = vld [vmem:[%s207_s0 + $0x8] sm:$0x1]  }
   0x5   :  { %s137_s30 = smov 72   ;;  %s138_s2 = smov 64   ;;  %v109_v9 = vld [vmem:[%s207_s0 + $0x7] sm:$0x1]   ;;  %v110_v10 = vld [vmem:[%s207_s0 + $0x6] sm:$0x1]  }
   0x6   :  { %13 = vrot.lane.b32.xlu0 %v102_v2, %s133_s16  ;;  %25 = vrot.lane.b32.xlu1 %v104_v3, %s134_s17  ;;  %s139_s7 = smov 56   ;;  %s140_s8 = smov 48   ;;  %v111_v11 = vld [vmem:[%s207_s0 + $0x5] sm:$0x1]   ;;  %v112_v12 = vld [vmem:[%s207_s0 + $0x4] sm:$0x1]  }
   0x7   :  { %s141_s13 = smov 40   ;;  %s142_s14 = smov 32   ;;  %v113_v13 = vld [vmem:[%s207_s0 + $0x3] sm:$0x1]   ;;  %v114_v14 = vld [vmem:[%s207_s0 + $0x2] sm:$0x1]  }
   0x8   :  { %s143_s19 = smov 24   ;;  %s144_s20 = smov 16   ;;  %v115_v15 = vld [vmem:[%s207_s0 + $0x1] sm:$0x1]   ;;  %vm27_vm4 = vcmask 851712   ;;  %vm33_vm5 = vcmask 786112  }
   0x9   :  { %s145_s0 = smov 8   ;;  %vm39_vm6 = vcmask 720512   ;;  %vm45_vm7 = vcmask 654912   ;;  %vm51_vm8 = vcmask 589312   ;;  %vm57_vm9 = vcmask 523712  }
   0xa   :  { %31 = vrot.lane.b32.xlu0 %v105_v4, %s135_s24  ;;  %37 = vrot.lane.b32.xlu1 %v106_v5, %s136_s25  ;;  %vm63_vm10 = vcmask 458112   ;;  %vm69_vm11 = vcmask 392512   ;;  %vm75_vm12 = vcmask 326912   ;;  %vm81_vm13 = vcmask 261312  }
   0xb   :  { %vm87_vm14 = vcmask 195712   ;;  %vm93_vm15 = vcmask 130112  }
   0xe   :  { %43 = vrot.lane.b32.xlu0 %v107_v7, %s137_s30  ;;  %49 = vrot.lane.b32.xlu1 %v108_v8, %s138_s2 }
  0x12   :  { %55 = vrot.lane.b32.xlu0 %v109_v9, %s139_s7  ;;  %61 = vrot.lane.b32.xlu1 %v110_v10, %s140_s8 }
  0x16   :  { %67 = vrot.lane.b32.xlu0 %v111_v11, %s141_s13  ;;  %73 = vrot.lane.b32.xlu1 %v112_v12, %s142_s14 }
  0x1a   :  { %79 = vrot.lane.b32.xlu0 %v113_v13, %s143_s19  ;;  %85 = vrot.lane.b32.xlu1 %v114_v14, %s144_s20 }
  0x1e   :  { %91 = vrot.lane.b32.xlu0 %v115_v15, %s145_s0 }
  0x74   :  { %v8_v16 = vpop.permute.xlu0 %7   ;;  %v20_v17 = vpop.permute.xlu1 %19  }
  0x75   :  { %10 = vst.msk [vmem:[#allocation0] sm:$0x1] %vm9_vm1, %v8_v16  }
  0x78   :  { %v14_v18 = vpop.permute.xlu0 %13   ;;  %v26_v19 = vpop.permute.xlu1 %25  }
  0x79   :  { %16 = vst.msk [vmem:[#allocation0] sm:$0x1] %vm15_vm2, %v14_v18  }
  0x7a   :  { %22 = vst.msk [vmem:[#allocation0] sm:$0x1] %vm21_vm3, %v20_v17  }
  0x7b   :  { %28 = vst.msk [vmem:[#allocation0] sm:$0x1] %vm27_vm4, %v26_v19  }
  0x7c   :  { %v32_v20 = vpop.permute.xlu0 %31   ;;  %v38_v21 = vpop.permute.xlu1 %37  }
  0x7d   :  { %34 = vst.msk [vmem:[#allocation0] sm:$0x1] %vm33_vm5, %v32_v20  }
  0x7e   :  { %40 = vst.msk [vmem:[#allocation0] sm:$0x1] %vm39_vm6, %v38_v21  }
  0x80   :  { %v44_v22 = vpop.permute.xlu0 %43   ;;  %v50_v23 = vpop.permute.xlu1 %49  }
  0x81   :  { %46 = vst.msk [vmem:[#allocation0] sm:$0x1] %vm45_vm7, %v44_v22  }
  0x82   :  { %52 = vst.msk [vmem:[#allocation0] sm:$0x1] %vm51_vm8, %v50_v23  }
  0x84   :  { %v56_v24 = vpop.permute.xlu0 %55   ;;  %v62_v25 = vpop.permute.xlu1 %61  }
  0x85   :  { %58 = vst.msk [vmem:[#allocation0] sm:$0x1] %vm57_vm9, %v56_v24  }
  0x86   :  { %64 = vst.msk [vmem:[#allocation0] sm:$0x1] %vm63_vm10, %v62_v25  }
  0x88   :  { %v68_v26 = vpop.permute.xlu0 %67   ;;  %v74_v27 = vpop.permute.xlu1 %73  }
  0x89   :  { %70 = vst.msk [vmem:[#allocation0] sm:$0x1] %vm69_vm11, %v68_v26  }
  0x8a   :  { %76 = vst.msk [vmem:[#allocation0] sm:$0x1] %vm75_vm12, %v74_v27  }
  0x8c   :  { %v80_v28 = vpop.permute.xlu0 %79   ;;  %v86_v29 = vpop.permute.xlu1 %85  }
  0x8d   :  { %82 = vst.msk [vmem:[#allocation0] sm:$0x1] %vm81_vm13, %v80_v28  }
  0x8e   :  { %88 = vst.msk [vmem:[#allocation0] sm:$0x1] %vm87_vm14, %v86_v29  }
  0x90   :  { %v92_v30 = vpop.permute.xlu0 %91  }
  0x91   :  { %94 = vst.msk [vmem:[#allocation0] sm:$0x1] %vm93_vm15, %v92_v30  }
  0x98   :  { %v98_v31 = vld [vmem:[#allocation0] sm:$0x1] }
  0x99   :  { %100 = vst [vmem:[%s208_s1] sm:$0x1] %v98_v31 }

// kernel: residual_block_forward.2
= control target key start
LH: loop header
LB: loop body
LE: loop exit
PB: predicated region body
PF: predicated region fallthrough
CT: control target
= control target key end

     0   :  { %v58_v0 = vlaneseq  ;;  %v497_v4 = vmov 0   ;;  %s498_s12 = smov 64   ;;  %vm177_vm4 = vcmask 523264   ;;  %s680_s0 = inlined_call_operand.vmem [shape: bf16[2,16,64], index: 0, kind: input, shape index: {}]   ;;  %s681_s1 = inlined_call_operand.vmem [shape: f32[1,64], index: 1, kind: input, shape index: {}]   ;;  %s682_s2 = inlined_call_operand.vmem [shape: f32[1,64], index: 2, kind: input, shape index: {}]   ;;  %s683_s3 = inlined_call_operand.vmem [shape: bf16[192,128], index: 3, kind: input, shape index: {}]   ;;  %s684_s4 = inlined_call_operand.vmem [shape: f32[1,128], index: 4, kind: input, shape index: {}]   ;;  %s685_s5 = inlined_call_operand.vmem [shape: bf16[2,16,128], index: 5, kind: output, shape index: {0}]   ;;  %s686_s6 = inlined_call_operand.vmem [shape: f32[1,1,128], index: 6, kind: output, shape index: {1}]   ;;  %s687_s7 = inlined_call_operand.vmem [shape: f32[1,1,128], index: 7, kind: output, shape index: {2}]  }
   0x1   :  { %v430_v1 = vld [vmem:[%s680_s0] sm:$0xff]   ;;  %v447_v2 = vld [vmem:[%s680_s0 + $0x8] sm:$0xff]   ;;  %295 = vmatprep.subr.bf16.mxu0 %v497_v4  ;;  %449 = vmatprep.subr.bf16.mxu1 %v497_v4  ;;  %v487_v26 = vld [vmem:[%s683_s3 + $0x10] sm:$0xff]  }
   0x2   :  { %v404_v3 = vld [vmem:[%s681_s1] ss:$0 sm:$0xff]  ;;  %v431_v5 = vunpack.c.l.bf16 %v430_v1  ;;  %v432_v6 = vunpack.c.h.bf16 %v430_v1  ;;  %v435_v8 = vunpack.c.l.bf16 %v447_v2  ;;  %v436_v9 = vunpack.c.h.bf16 %v447_v2  ;;  %v486_v16 = vld [vmem:[%s683_s3 + $0x8] sm:$0xff]   ;;  %v488_v32 = vld [vmem:[%s683_s3 + $0x18] sm:$0xff]  }
   0x3   :  { %v405_v7 = vld [vmem:[%s682_s2] ss:$0 sm:$0xff]  ;;  %v556_v11 = vshrl.u32 %v58_v0, 7  ;;  %v490_v56 = vld [vmem:[%s683_s3 + $0x28] sm:$0xff]   ;;  %v491_v63 = vld [vmem:[%s683_s3 + $0x30] sm:$0xff]  }
   0x4   :  { %v485_v10 = vld [vmem:[%s683_s3] sm:$0xff]   ;;  %v39_v12 = vmul.f32 %v431_v5, %v404_v3  ;;  %v40_v13 = vmul.f32 %v432_v6, %v404_v3  ;;  %v41_v14 = vmul.f32 %v435_v8, %v404_v3  ;;  %v42_v15 = vmul.f32 %v436_v9, %v404_v3  ;;  %v492_v0 = vld [vmem:[%s683_s3 + $0x38] sm:$0xff]   ;;  %v494_v2 = vld [vmem:[%s683_s3 + $0x48] sm:$0xff]  }
   0x5   :  { %296 = vmatpush1.bf16.msra.mxu0 %v485_v10  ;;  %461 = vmatpush1.bf16.msra.mxu1 %v485_v10  ;;  %v60_v17 = vadd.s32 8, %v556_v11  ;;  %vm144_vm1 = vcmp.lt.s32.totalorder %v556_v11, 7  ;;  %v67_v37 = vand.u32 15, %v556_v11  ;;  %vm119_vm2 = vcmp.lt.s32.totalorder %v556_v11, 1  ;;  %v489_v44 = vld [vmem:[%s683_s3 + $0x20] sm:$0xff]   ;;  %v495_v3 = vld [vmem:[%s683_s3 + $0x50] sm:$0xff]  }
   0x6   :  { %v50_v18 = vadd.f32 %v405_v7, %v39_v12  ;;  %v51_v19 = vadd.f32 %v405_v7, %v40_v13  ;;  %v52_v20 = vadd.f32 %v405_v7, %v41_v14  ;;  %v53_v21 = vadd.f32 %v405_v7, %v42_v15  ;;  %297 = vmatprep.subr.bf16.mxu0 %v497_v4  ;;  %v493_v1 = vld [vmem:[%s683_s3 + $0x40] sm:$0xff]   ;;  %v496_v5 = vld [vmem:[%s683_s3 + $0x58] sm:$0xff]  }
   0x7   :  { %450 = vmatprep.subr.bf16.mxu1 %v497_v4  ;;  %v74_v28 = vand.u32 15, %v60_v17  ;;  %v62_v39 = vadd.s32 24, %v556_v11  ;;  %vm595_vm3 = vcmp.ne.s32.totalorder %v67_v37, 0  ;;  %v61_v53 = vadd.s32 16, %v556_v11  ;;  %v406_v17 = vld [vmem:[%s684_s4] ss:$0 sm:$0xff] }
   0x8   :  { %v54_v22 = vmax.f32 %v50_v18, 0.0  ;;  %v55_v23 = vmax.f32 %v51_v19, 0.0  ;;  %v56_v24 = vmax.f32 %v52_v20, 0.0  ;;  %v57_v25 = vmax.f32 %v53_v21, 0.0 }
   0x9   :  { %298 = vmatpush1.bf16.msra.mxu0 %v486_v16  ;;  %462 = vmatpush1.bf16.msra.mxu1 %v486_v16  ;;  %vm574_vm0 = vcmp.ne.s32.totalorder %v74_v28, 15  ;;  %v88_v48 = vand.u32 15, %v62_v39  ;;  %v81_v58 = vand.u32 15, %v61_v53 }
   0xa   :  { %v475_v27 = vpack.i.bf16 %v55_v23, %v54_v22  ;;  %299 = vmatprep.subr.bf16.mxu0 %v497_v4  ;;  %451 = vmatprep.subr.bf16.mxu1 %v497_v4  ;;  %v116_v29 = vrot.slane %v55_v23, 7  ;;  %v115_v30 = vrot.slane %v54_v22, 7  ;;  %v480_v31 = vpack.i.bf16 %v57_v25, %v56_v24 }
   0xb   :  { %v140_v33 = vrot.slane %v54_v22, 1  ;;  %v141_v35 = vrot.slane %v55_v23, 1  ;;  %v142_v36 = vrot.slane %v56_v24, 1  ;;  %v118_v38 = vrot.slane %v57_v25, 7 }
   0xc   :  { %476 = vrot.lane.b32.xlu0 %v475_v27, %s498_s12  ;;  %v588_v42 = vsel %vm119_vm2, %v115_v30, %v116_v29  ;;  %v143_v43 = vrot.slane %v57_v25, 1  ;;  %vm139_vm5 = vcmp.ne.s32.totalorder %v88_v48, 15  ;;  %v117_v54 = vrot.slane %v56_v24, 7 }
   0xd   :  { %300 = vmatpush1.bf16.msra.mxu0 %v487_v26  ;;  %463 = vmatpush1.bf16.msra.mxu1 %v487_v26  ;;  %v146_v40 = vsel %vm144_vm1, %v141_v35, %v142_v36  ;;  %v147_v41 = vsel %vm144_vm1, %v140_v33, %v141_v35  ;;  %v601_v47 = vsel %vm119_vm2, %v118_v38, %v115_v30  ;;  %vm624_vm6 = vcmp.ne.s32.totalorder %v81_v58, 0 }
   0xe   :  { %301 = vmatprep.subr.bf16.mxu0 %v497_v4  ;;  %452 = vmatprep.subr.bf16.mxu1 %v497_v4  ;;  %v158_v45 = vsel %vm574_vm0, %v146_v40, 0.0  ;;  %v132_v50 = vsel %vm595_vm3, %v601_v47, 0.0  ;;  %v145_v51 = vsel %vm144_vm1, %v142_v36, %v143_v43  ;;  %v148_v52 = vsel %vm144_vm1, %v143_v43, %v140_v33 }
   0xf   :  { %v183_v49 = vpack.c.bf16 %v158_v45, %v147_v41  ;;  %v160_v55 = vsel %vm139_vm5, %v148_v52, 0.0  ;;  %v120_v59 = vsel %vm119_vm2, %v117_v54, %v118_v38  ;;  %v121_v60 = vsel %vm119_vm2, %v116_v29, %v117_v54 }
  0x10   :  { %481 = vrot.lane.b32.xlu0 %v480_v31, %s498_s12  ;;  %v185_v57 = vpack.c.bf16 %v160_v55, %v145_v51  ;;  %v134_v62 = vsel %vm624_vm6, %v121_v60, 0.0 }
  0x11   :  { %302 = vmatpush1.bf16.msra.mxu0 %v488_v32  ;;  %464 = vmatpush1.bf16.msra.mxu1 %v488_v32 }
  0x12   :  { %303 = vmatprep.subr.bf16.mxu0 %v497_v4  ;;  %453 = vmatprep.subr.bf16.mxu1 %v497_v4 }
  0x13   :  { %419 = vmatprep.mubr.msk.bf16.mxu0 %vm177_vm4, %v183_v49  ;;  %420 = vmatprep.mubr.msk.bf16.mxu1 %vm177_vm4, %v185_v57 }
  0x15   :  { %304 = vmatpush1.bf16.msra.mxu0 %v489_v44  ;;  %465 = vmatpush1.bf16.msra.mxu1 %v489_v44 }
  0x16   :  { %305 = vmatprep.subr.bf16.mxu0 %v497_v4  ;;  %454 = vmatprep.subr.bf16.mxu1 %v497_v4 }
  0x19   :  { %306 = vmatpush1.bf16.msra.mxu0 %v490_v56  ;;  %466 = vmatpush1.bf16.msra.mxu1 %v490_v56 }
  0x1a   :  { %307 = vmatprep.subr.bf16.mxu0 %v497_v4  ;;  %455 = vmatprep.subr.bf16.mxu1 %v497_v4 }
  0x1d   :  { %308 = vmatpush1.bf16.msra.mxu0 %v491_v63  ;;  %467 = vmatpush1.bf16.msra.mxu1 %v491_v63 }
  0x1e   :  { %309 = vmatprep.subr.bf16.mxu0 %v497_v4  ;;  %456 = vmatprep.subr.bf16.mxu1 %v497_v4 }
  0x21   :  { %310 = vmatpush1.bf16.msra.mxu0 %v492_v0  ;;  %468 = vmatpush1.bf16.msra.mxu1 %v492_v0 }
  0x22   :  { %311 = vmatprep.subr.bf16.mxu0 %v497_v4  ;;  %457 = vmatprep.subr.bf16.mxu1 %v497_v4 }
  0x25   :  { %312 = vmatpush1.bf16.msra.mxu0 %v493_v1  ;;  %469 = vmatpush1.bf16.msra.mxu1 %v493_v1 }
  0x26   :  { %313 = vmatprep.subr.bf16.mxu0 %v497_v4  ;;  %458 = vmatprep.subr.bf16.mxu1 %v497_v4 }
  0x29   :  { %314 = vmatpush1.bf16.msra.mxu0 %v494_v2  ;;  %470 = vmatpush1.bf16.msra.mxu1 %v494_v2 }
  0x2a   :  { %315 = vmatprep.subr.bf16.mxu0 %v497_v4  ;;  %459 = vmatprep.subr.bf16.mxu1 %v497_v4 }
  0x2d   :  { %316 = vmatpush1.bf16.msra.mxu0 %v495_v3  ;;  %471 = vmatpush1.bf16.msra.mxu1 %v495_v3 }
  0x2e   :  { %317 = vmatprep.subr.bf16.mxu0 %v497_v4  ;;  %460 = vmatprep.subr.bf16.mxu1 %v497_v4 }
  0x31   :  { %318 = vmatpush1.bf16.msra.mxu0 %v496_v5  ;;  %472 = vmatpush1.bf16.msra.mxu1 %v496_v5 }
  0x7e   :  { %v477_v6 = vpop.permute.xlu0 %476 }
  0x7f   :  { %v479_v7 = vunpack.i.h.bf16 %v477_v6  ;;  %v478_v8 = vunpack.i.l.bf16 %v477_v6 }
  0x81   :  { %v178_v9 = vsel %vm177_vm4, %v132_v50, %v478_v8  ;;  %v179_v10 = vsel %vm177_vm4, %v588_v42, %v479_v7 }
  0x82   :  { %v482_v11 = vpop.permute.xlu0 %481  ;;  %v182_v12 = vpack.c.bf16 %v179_v10, %v178_v9 }
  0x83   :  { %v484_v13 = vunpack.i.h.bf16 %v482_v11  ;;  %v483_v14 = vunpack.i.l.bf16 %v482_v11 }
  0x84   :  { %328 = vmatmul.mubr.bf16.vlgmr.msra.gmra.mrb[0].mxu0 %v182_v12 }
  0x85   :  { %v180_v15 = vsel %vm177_vm4, %v134_v62, %v483_v14  ;;  %v181_v16 = vsel %vm177_vm4, %v120_v59, %v484_v13 }
  0x86   :  { %v184_v4 = vpack.c.bf16 %v181_v16, %v180_v15 }
  0x88   :  { %336 = vmatmul.mubr.bf16.vlgmr.msra.gmra.mrb[0].mxu1 %v184_v4 }
 0x157   :  { %v329_v18 = vpop.f32.mrb[0].mxu0 }
 0x158   :  { %v331_v19 = vpop.f32.mrb[1].mxu0  ;;  %v330_v21 = vadd.f32 %v406_v17, %v329_v18 }
 0x159   :  { %v332_v20 = vpop.f32.mrb[2].mxu0 }
 0x15a   :  { %v333_v22 = vadd.f32 %v406_v17, %v332_v20  ;;  %v334_v23 = vpop.f32.mrb[3].mxu0 }
 0x15b   :  { %v337_v24 = vpop.f32.mrb[0].mxu1 }
 0x15c   :  { %v344_v25 = vpack.c.bf16 %v333_v22, %v330_v21  ;;  %v339_v26 = vpop.f32.mrb[1].mxu1  ;;  %v338_v30 = vadd.f32 %v406_v17, %v337_v24 }
 0x15d   :  { %v340_v27 = vpop.f32.mrb[2].mxu1 }
 0x15e   :  { %441 = vst [vmem:[%s685_s5] sm:$0xff] %v344_v25   ;;  %v364_v28 = vunpack.c.l.bf16 %v344_v25  ;;  %v365_v29 = vunpack.c.h.bf16 %v344_v25  ;;  %v341_v31 = vadd.f32 %v406_v17, %v340_v27  ;;  %v342_v32 = vpop.f32.mrb[3].mxu1 }
 0x160   :  { %v378_v33 = vmul.f32 %v364_v28, %v364_v28  ;;  %v379_v34 = vmul.f32 %v365_v29, %v365_v29  ;;  %v345_v35 = vpack.c.bf16 %v341_v31, %v338_v30  ;;  %v368_v36 = vadd.f32 %v365_v29, %v364_v28 }
 0x162   :  { %448 = vst [vmem:[%s685_s5 + $0x8] sm:$0xff] %v345_v35   ;;  %v366_v37 = vunpack.c.l.bf16 %v345_v35  ;;  %v367_v38 = vunpack.c.h.bf16 %v345_v35  ;;  %v382_v39 = vadd.f32 %v379_v34, %v378_v33 }
 0x164   :  { %v369_v40 = vadd.f32 %v368_v36, %v366_v37  ;;  %v380_v41 = vmul.f32 %v366_v37, %v366_v37  ;;  %v381_v43 = vmul.f32 %v367_v38, %v367_v38 }
 0x166   :  { %v370_v42 = vadd.f32 %v369_v40, %v367_v38  ;;  %v383_v44 = vadd.f32 %v382_v39, %v380_v41 }
 0x168   :  { %v371_v45 = vrot.slane %v370_v42, 4  ;;  %v384_v46 = vadd.f32 %v383_v44, %v381_v43 }
 0x16a   :  { %v372_v47 = vadd.f32 %v371_v45, %v370_v42  ;;  %v385_v48 = vrot.slane %v384_v46, 4 }
 0x16c   :  { %v373_v49 = vrot.slane %v372_v47, 2  ;;  %v386_v50 = vadd.f32 %v385_v48, %v384_v46 }
 0x16e   :  { %v374_v51 = vadd.f32 %v373_v49, %v372_v47  ;;  %v387_v52 = vrot.slane %v386_v50, 2 }
 0x170   :  { %v375_v53 = vrot.slane %v374_v51, 1  ;;  %v388_v54 = vadd.f32 %v387_v52, %v386_v50 }
 0x172   :  { %v376_v55 = vadd.f32 %v375_v53, %v374_v51  ;;  %v389_v56 = vrot.slane %v388_v54, 1 }
 0x174   :  { %377 = vst [vmem:[%s686_s6] sm:$0x1] %v376_v55  ;;  %v390_v57 = vadd.f32 %v389_v56, %v388_v54 }
 0x176   :  { %391 = vst [vmem:[%s687_s7] sm:$0x1] %v390_v57 }

// kernel: residual_block_forward.3
= control target key start
LH: loop header
LB: loop body
LE: loop exit
PB: predicated region body
PF: predicated region fallthrough
CT: control target
= control target key end

     0   :  { %v637_v0 = vmov 0   ;;  %v58_v21 = vlaneseq  ;;  %vm408_vm0 = vcmask 523264   ;;  %vm638_vm4 = vmmov 1   ;;  %s833_s4 = inlined_call_operand.vmem [shape: bf16[448,128], index: 4, kind: input, shape index: {}]   ;;  %s834_s1 = inlined_call_operand.vmem [shape: bf16[2,16,128], index: 1, kind: input, shape index: {}]   ;;  %s835_s2 = inlined_call_operand.vmem [shape: f32[1,128], index: 2, kind: input, shape index: {}]   ;;  %s836_s3 = inlined_call_operand.vmem [shape: f32[1,128], index: 3, kind: input, shape index: {}]   ;;  %s837_s0 = inlined_call_operand.vmem [shape: bf16[2,16,64], index: 0, kind: input, shape index: {}]   ;;  %s838_s5 = inlined_call_operand.vmem [shape: f32[1,128], index: 5, kind: input, shape index: {}]   ;;  %s839_s6 = inlined_call_operand.vmem [shape: f32[2,16,128], index: 6, kind: output, shape index: {}]  }
   0x1   :  { %464 = vmatprep.subr.bf16.mxu1 %v637_v0  ;;  %v607_v1 = vld [vmem:[%s833_s4 + $0x80] sm:$0xff]   ;;  %v608_v2 = vld [vmem:[%s833_s4 + $0x88] sm:$0xff]   ;;  %v611_v5 = vld [vmem:[%s833_s4 + $0x90] sm:$0xff]  }
   0x2   :  { %465 = vmatpush1.bf16.msra.mxu1 %v607_v1  ;;  %v609_v3 = vld [vmem:[%s833_s4 + $0x40] sm:$0xff]   ;;  %v612_v6 = vld [vmem:[%s833_s4 + $0x48] sm:$0xff]   ;;  %v615_v8 = vld [vmem:[%s833_s4 + $0x50] sm:$0xff]   ;;  %v759_v28 = vshrl.u32 %v58_v21, 7 }
   0x3   :  { %466 = vmatprep.subr.bf16.mxu1 %v637_v0  ;;  %v610_v4 = vld [vmem:[%s833_s4] sm:$0xff]   ;;  %577 = vmatprep.subr.bf16.mxu0 %v609_v3  ;;  %v613_v7 = vld [vmem:[%s833_s4 + $0x8] sm:$0xff]   ;;  %v616_v9 = vld [vmem:[%s833_s4 + $0x10] sm:$0xff]  }
   0x4   :  { %578 = vmatpush3.bf16.msra.mxu0 %v610_v4  ;;  %v614_v10 = vld [vmem:[%s833_s4 + $0x98] sm:$0xff]   ;;  %v617_v12 = vld [vmem:[%s833_s4 + $0xa0] sm:$0xff]   ;;  %v620_v15 = vld [vmem:[%s833_s4 + $0xa8] sm:$0xff]   ;;  %v67_v40 = vand.u32 15, %v759_v28  ;;  %v61_v46 = vadd.s32 16, %v759_v28  ;;  %vm119_vm1 = vcmp.lt.s32.totalorder %v759_v28, 1 }
   0x5   :  { %579 = vmatprep.subr.bf16.mxu0 %v612_v6  ;;  %v618_v11 = vld [vmem:[%s833_s4 + $0x58] sm:$0xff]   ;;  %v621_v14 = vld [vmem:[%s833_s4 + $0x60] sm:$0xff]   ;;  %v624_v17 = vld [vmem:[%s833_s4 + $0x68] sm:$0xff]   ;;  %v60_v54 = vadd.s32 8, %v759_v28  ;;  %vm144_vm3 = vcmp.lt.s32.totalorder %v759_v28, 7 }
   0x6   :  { %467 = vmatpush1.bf16.msra.mxu1 %v608_v2  ;;  %v619_v13 = vld [vmem:[%s833_s4 + $0x18] sm:$0xff]   ;;  %v622_v16 = vld [vmem:[%s833_s4 + $0x20] sm:$0xff]   ;;  %v623_v18 = vld [vmem:[%s833_s4 + $0xb0] sm:$0xff]   ;;  %vm111_vm2 = vcmp.ne.s32.totalorder %v67_v40, 0  ;;  %v81_v57 = vand.u32 15, %v61_v46 }
   0x7   :  { %468 = vmatprep.subr.bf16.mxu1 %v637_v0  ;;  %v625_v19 = vld [vmem:[%s833_s4 + $0x28] sm:$0xff]   ;;  %v627_v20 = vld [vmem:[%s833_s4 + $0x70] sm:$0xff]   ;;  %v626_v22 = vld [vmem:[%s833_s4 + $0xb8] sm:$0xff]   ;;  %v74_v4 = vand.u32 15, %v60_v54 }
   0x8   :  { %580 = vmatpush3.bf16.msra.mxu0 %v613_v7  ;;  %v628_v23 = vld [vmem:[%s833_s4 + $0x30] sm:$0xff]   ;;  %v630_v24 = vld [vmem:[%s833_s4 + $0x78] sm:$0xff]   ;;  %v569_v25 = vld [vmem:[%s834_s1] sm:$0xff]   ;;  %vm113_vm6 = vcmp.ne.s32.totalorder %v81_v57, 0 }
   0x9   :  { %581 = vmatprep.subr.bf16.mxu0 %v615_v8  ;;  %v576_v26 = vld [vmem:[%s834_s1 + $0x8] sm:$0xff]   ;;  %v521_v27 = vld [vmem:[%s835_s2] ss:$0 sm:$0xff]  ;;  %v570_v29 = vunpack.c.l.bf16 %v569_v25  ;;  %v571_v30 = vunpack.c.h.bf16 %v569_v25  ;;  %v631_v34 = vld [vmem:[%s833_s4 + $0x38] sm:$0xff]   ;;  %vm137_vm7 = vcmp.ne.s32.totalorder %v74_v4, 15 }
   0xa   :  { %469 = vmatpush1.bf16.msra.mxu1 %v611_v5  ;;  %v575_v31 = vunpack.c.h.bf16 %v576_v26  ;;  %v574_v32 = vunpack.c.l.bf16 %v576_v26  ;;  %v522_v33 = vld [vmem:[%s836_s3] ss:$0 sm:$0xff]  ;;  %v632_v50 = vld [vmem:[%s833_s4 + $0xc8] sm:$0xff]   ;;  %vm554_vm5 = vmpackc.low %vm638_vm4, %vm111_vm2 }
   0xb   :  { %470 = vmatprep.subr.bf16.mxu1 %v637_v0  ;;  %v39_v35 = vmul.f32 %v570_v29, %v521_v27  ;;  %v40_v36 = vmul.f32 %v571_v30, %v521_v27  ;;  %v629_v39 = vld [vmem:[%s833_s4 + $0xc0] sm:$0xff]   ;;  %v633_v62 = vld [vmem:[%s833_s4 + $0xd0] sm:$0xff]   ;;  %v634_v6 = vld [vmem:[%s833_s4 + $0xd8] sm:$0xff]  }
   0xc   :  { %582 = vmatpush3.bf16.msra.mxu0 %v616_v9  ;;  %v42_v37 = vmul.f32 %v575_v31, %v521_v27  ;;  %v41_v38 = vmul.f32 %v574_v32, %v521_v27  ;;  %v635_v41 = vld [vmem:[%s837_s0] sm:$0xff]   ;;  %vm557_vm8 = vmpackc.low %vm638_vm4, %vm113_vm6 }
   0xd   :  { %583 = vmatprep.subr.bf16.mxu0 %v618_v11  ;;  %v50_v42 = vadd.f32 %v522_v33, %v39_v35  ;;  %v51_v43 = vadd.f32 %v522_v33, %v40_v36  ;;  %560 = vmatprep.mubr.msk.bf16.mxu1 %vm408_vm0, %v635_v41  ;;  %vm561_vm9 = vmpackc.low %vm137_vm7, %vm638_vm4 }
   0xe   :  { %471 = vmatpush1.bf16.msra.mxu1 %v614_v10  ;;  %v53_v44 = vadd.f32 %v522_v33, %v42_v37  ;;  %v52_v45 = vadd.f32 %v522_v33, %v41_v38  ;;  %v62_v10 = vadd.s32 24, %v759_v28 }
   0xf   :  { %472 = vmatprep.subr.bf16.mxu1 %v637_v0  ;;  %v54_v47 = vmax.f32 %v50_v42, 0.0  ;;  %v55_v48 = vmax.f32 %v51_v43, 0.0 }
  0x10   :  { %584 = vmatpush3.bf16.msra.mxu0 %v619_v13  ;;  %v57_v49 = vmax.f32 %v53_v44, 0.0  ;;  %v56_v51 = vmax.f32 %v52_v45, 0.0  ;;  %v636_v13 = vld [vmem:[%s837_s0 + $0x8] sm:$0xff]  }
  0x11   :  { %585 = vmatprep.subr.bf16.mxu0 %v621_v14  ;;  %v115_v52 = vrot.slane %v54_v47, 7  ;;  %v116_v53 = vrot.slane %v55_v48, 7  ;;  %v170_v55 = vpack.c.bf16 %v55_v48, %v54_v47  ;;  %v140_v58 = vrot.slane %v54_v47, 1 }
  0x12   :  { %473 = vmatpush1.bf16.msra.mxu1 %v617_v12  ;;  %v118_v56 = vrot.slane %v57_v49, 7  ;;  %v141_v59 = vrot.slane %v55_v48, 1  ;;  %v174_v63 = vpack.c.bf16 %v57_v49, %v56_v51  ;;  %v117_v1 = vrot.slane %v56_v51, 7 }
  0x13   :  { %474 = vmatprep.subr.bf16.mxu1 %v637_v0  ;;  %v122_v60 = vsel %vm119_vm1, %v115_v52, %v116_v53  ;;  %447 = vmatprep.mubr.bf16.mxu0 %v170_v55  ;;  %v142_v2 = vrot.slane %v56_v51, 1  ;;  %v143_v14 = vrot.slane %v57_v49, 1 }
  0x14   :  { %586 = vmatpush3.bf16.msra.mxu0 %v622_v16  ;;  %v123_v61 = vsel %vm119_vm1, %v118_v56, %v115_v52  ;;  %v147_v5 = vsel %vm144_vm3, %v140_v58, %v141_v59  ;;  %v120_v7 = vsel %vm119_vm1, %v117_v1, %v118_v56  ;;  %v121_v8 = vsel %vm119_vm1, %v116_v53, %v117_v1 }
  0x15   :  { %587 = vmatprep.subr.bf16.mxu0 %v624_v17  ;;  %v555_v3 = vpack.c.bf16 %v122_v60, %v123_v61  ;;  %v146_v9 = vsel %vm144_vm3, %v141_v59, %v142_v2  ;;  %v558_v11 = vpack.c.bf16 %v120_v7, %v121_v8  ;;  %v148_v16 = vsel %vm144_vm3, %v143_v14, %v140_v58 }
  0x16   :  { %475 = vmatpush1.bf16.msra.mxu1 %v620_v15  ;;  %v562_v12 = vpack.c.bf16 %v146_v9, %v147_v5  ;;  %v88_v15 = vand.u32 15, %v62_v10 }
  0x17   :  { %476 = vmatprep.subr.bf16.mxu1 %v637_v0 }
  0x18   :  { %588 = vmatpush3.bf16.msra.mxu0 %v625_v19  ;;  %vm139_vm10 = vcmp.ne.s32.totalorder %v88_v15, 15 }
  0x19   :  { %589 = vmatprep.subr.bf16.mxu0 %v627_v20  ;;  %vm565_vm11 = vmpackc.low %vm139_vm10, %vm638_vm4 }
  0x1a   :  { %477 = vmatpush1.bf16.msra.mxu1 %v623_v18 }
  0x1b   :  { %478 = vmatprep.subr.bf16.mxu1 %v637_v0 }
  0x1c   :  { %590 = vmatpush3.bf16.msra.mxu0 %v628_v23 }
  0x1d   :  { %591 = vmatprep.subr.bf16.mxu0 %v630_v24 }
  0x1e   :  { %479 = vmatpush1.bf16.msra.mxu1 %v626_v22  ;;  %v525_v22 = vld [vmem:[%s838_s5] ss:$0 sm:$0xff] }
  0x1f   :  { %480 = vmatprep.subr.bf16.mxu1 %v637_v0 }
  0x20   :  { %592 = vmatpush3.bf16.msra.mxu0 %v631_v34 }
  0x22   :  { %481 = vmatpush1.bf16.msra.mxu1 %v629_v39 }
  0x23   :  { %482 = vmatprep.subr.bf16.mxu1 %v637_v0  ;;  %556 = vmatmul.mubr.msk.bf16.vlgmr.msra.gmra.mrb[0].mxu0 %vm554_vm5, %v555_v3 }
  0x24   :  { %455 = vmatprep.mubr.bf16.mxu0 %v174_v63 }
  0x26   :  { %483 = vmatpush1.bf16.msra.mxu1 %v632_v50 }
  0x27   :  { %484 = vmatprep.subr.bf16.mxu1 %v637_v0 }
  0x2a   :  { %485 = vmatpush1.bf16.msra.mxu1 %v633_v62 }
  0x2b   :  { %486 = vmatprep.subr.bf16.mxu1 %v637_v0  ;;  %559 = vmatmul.mubr.msk.bf16.gmra.mrb[4].mxu0 %vm557_vm8, %v558_v11  ;;  %v145_v0 = vsel %vm144_vm3, %v142_v2, %v143_v14 }
  0x2c   :  { %v566_v17 = vpack.c.bf16 %v148_v16, %v145_v0 }
  0x2e   :  { %487 = vmatpush1.bf16.msra.mxu1 %v634_v6 }
  0x31   :  { %563 = vmatmul.mubr.msk.bf16.vlgmr.msra.gmra.mrb[0].mxu1 %vm561_vm9, %v562_v12 }
  0x32   :  { %564 = vmatprep.mubr.msk.bf16.mxu1 %vm408_vm0, %v636_v13 }
  0x39   :  { %567 = vmatmul.mubr.msk.bf16.gmra.mrb[4].mxu1 %vm565_vm11, %v566_v17 }
  0xf6   :  { %v593_v18 = vpop.f32.mrb[0].mxu0 }
  0xf7   :  { %v594_v19 = vpop.f32.mrb[1].mxu0 }
  0xf8   :  { %v595_v20 = vadd.f32 %v594_v19, %v593_v18  ;;  %v596_v21 = vpop.f32.mrb[2].mxu0 }
  0xf9   :  { %v597_v23 = vpop.f32.mrb[3].mxu0 }
  0xfa   :  { %v598_v24 = vadd.f32 %v597_v23, %v596_v21  ;;  %v450_v25 = vadd.f32 %v595_v20, %v525_v22 }
  0xfc   :  { %v453_v31 = vadd.f32 %v598_v24, %v525_v22 }
  0xfe   :  { %v599_v26 = vpop.f32.mrb[4].mxu0 }
  0xff   :  { %v600_v29 = vpop.f32.mrb[5].mxu0 }
 0x100   :  { %v601_v32 = vadd.f32 %v600_v29, %v599_v26  ;;  %v602_v33 = vpop.f32.mrb[6].mxu0 }
 0x101   :  { %v603_v36 = vpop.f32.mrb[7].mxu0 }
 0x102   :  { %v604_v38 = vadd.f32 %v603_v36, %v602_v33  ;;  %v458_v39 = vadd.f32 %v601_v32, %v525_v22 }
 0x104   :  { %v498_v27 = vpop.f32.mrb[0].mxu1  ;;  %v461_v43 = vadd.f32 %v604_v38, %v525_v22 }
 0x105   :  { %v499_v28 = vadd.f32 %v498_v27, %v450_v25  ;;  %v500_v30 = vpop.f32.mrb[1].mxu1 }
 0x106   :  { %v501_v34 = vpop.f32.mrb[2].mxu1 }
 0x107   :  { %513 = vst [vmem:[%s839_s6] sm:$0xff] %v499_v28  ;;  %v502_v35 = vadd.f32 %v501_v34, %v453_v31  ;;  %v503_v37 = vpop.f32.mrb[3].mxu1 }
 0x109   :  { %514 = vst [vmem:[%s839_s6 + $0x8] sm:$0xff] %v502_v35 }
 0x10c   :  { %v506_v40 = vpop.f32.mrb[4].mxu1 }
 0x10d   :  { %v507_v41 = vadd.f32 %v506_v40, %v458_v39  ;;  %v508_v42 = vpop.f32.mrb[5].mxu1 }
 0x10e   :  { %v509_v44 = vpop.f32.mrb[6].mxu1 }
 0x10f   :  { %515 = vst [vmem:[%s839_s6 + $0x10] sm:$0xff] %v507_v41  ;;  %v510_v45 = vadd.f32 %v509_v44, %v461_v43  ;;  %v511_v46 = vpop.f32.mrb[7].mxu1 }
 0x111   :  { %516 = vst [vmem:[%s839_s6 + $0x18] sm:$0xff] %v510_v45 }

</bundles_post_ra>
